<compile_context>
chip_gen: v7x
topology: tpu7x:2x2x1
jax: 0.10.0
libtpu: 0.0.40
codegen_flags: <defaults>
</compile_context>

<pallas_src>
import functools

import jax
import jax.numpy as jnp
from jax.experimental import pallas as pl
from jax.experimental.pallas import tpu as pltpu

STUDENT_TEMP = 0.1
TEACHER_TEMP = 0.04
CENTER_MOMENTUM = 0.9


def _dino_loss_kernel(*refs, n_student, n_teacher,
                      inv_student_temp, inv_teacher_temp):
    """One batch tile: emits partial CE sum and partial raw-teacher sum."""
    s_refs = refs[:n_student]                       # each (TILE_B, D)
    t_refs = refs[n_student:n_student + n_teacher]  # each (TILE_B, D)
    c_ref = refs[n_student + n_teacher]             # (1, D) f32
    loss_ref = refs[n_student + n_teacher + 1]      # (1, 1, 128) f32 VMEM
    tsum_ref = refs[n_student + n_teacher + 2]      # (1, 1, D)  f32 VMEM

    tb, d = s_refs[0].shape
    # Hoisted once per tile: reused by every teacher view below.
    center_scaled = c_ref[...].astype(jnp.float32) * inv_teacher_temp   # (1, D)

    def student_logsm(ref):
        s = ref[...].astype(jnp.float32) * inv_student_temp             # (TB, D)
        s = s - jnp.max(s, axis=-1, keepdims=True)
        return s - jnp.log(jnp.sum(jnp.exp(s), axis=-1, keepdims=True))

    def teacher_sm(ref):
        t_raw = ref[...].astype(jnp.float32)                            # (TB, D)
        t = t_raw * inv_teacher_temp - center_scaled
        t = t - jnp.max(t, axis=-1, keepdims=True)
        e = jnp.exp(t)
        # one divide per row (EUP), then broadcast multiply (VPU)
        inv_den = 1.0 / jnp.sum(e, axis=-1, keepdims=True)
        return e * inv_den, t_raw

    n_diag = min(n_student, n_teacher)

    s_ls_sum = jnp.zeros((tb, d), jnp.float32)
    t_sm_sum = jnp.zeros((tb, d), jnp.float32)
    t_raw_sum = jnp.zeros((1, d), jnp.float32)
    diag = jnp.zeros((), jnp.float32)

    # Views sharing an index contribute to the excluded (ti == si) diagonal,
    # so compute both distributions together and accumulate the correction.
    for i in range(n_diag):
        s_ls = student_logsm(s_refs[i])
        t_p, t_raw = teacher_sm(t_refs[i])
        s_ls_sum = s_ls_sum + s_ls
        t_sm_sum = t_sm_sum + t_p
        t_raw_sum = t_raw_sum + jnp.sum(t_raw, axis=0, keepdims=True)
        diag = diag + jnp.sum(t_p * s_ls)

    for i in range(n_diag, n_student):
        s_ls_sum = s_ls_sum + student_logsm(s_refs[i])

    for i in range(n_diag, n_teacher):
        t_p, t_raw = teacher_sm(t_refs[i])
        t_sm_sum = t_sm_sum + t_p
        t_raw_sum = t_raw_sum + jnp.sum(t_raw, axis=0, keepdims=True)

    # cross = sum over all (ti, si) pairs; subtract the ti == si diagonal.
    cross = jnp.sum(t_sm_sum * s_ls_sum)
    loss_partial = -(cross - diag)   # sum_{ti!=si} sum_{b in tile, d} -t_sm*s_ls
    loss_ref[...] = jnp.broadcast_to(loss_partial, loss_ref.shape)
    tsum_ref[...] = t_raw_sum.reshape(tsum_ref.shape)


def _pick_tile_b(batch, bytes_per_sample, budget_bytes=8 << 20):
    """Largest batch tile that divides `batch`, is 8-aligned (or == batch),
    and keeps the double-buffered input blocks under `budget_bytes`."""
    candidates = [tb for tb in range(1, batch + 1)
                  if batch % tb == 0 and (tb == batch or tb % 8 == 0)]
    fitting = [tb for tb in candidates if 2 * tb * bytes_per_sample <= budget_bytes]
    return max(fitting) if fitting else min(candidates)


def dino_loss(student_output, teacher_output, center,
              student_temp=STUDENT_TEMP, teacher_temp=TEACHER_TEMP,
              center_momentum=CENTER_MOMENTUM, tile_b=None):
    """Returns (total_loss scalar, updated center (1, D)).

    student_output / teacher_output: sequences of (B, D) arrays (any float
    dtype -- kept native in HBM, upcast to f32 inside the kernel).
    """
    student_output = list(student_output)
    teacher_output = list(teacher_output)
    ns, nt = len(student_output), len(teacher_output)
    b, d = student_output[0].shape
    center_f32 = center.astype(jnp.float32)

    views = student_output + teacher_output
    # bytes per batch row across all views + f32 accumulators (heuristic)
    bytes_per_sample = sum(d * jnp.dtype(v.dtype).itemsize for v in views) + 4 * d * 4
    if tile_b is None:
        tile_b = _pick_tile_b(b, bytes_per_sample)
    assert b % tile_b == 0, (b, tile_b)
    num_tiles = b // tile_b
    n_terms = ns * nt - min(ns, nt)

    kernel = functools.partial(
        _dino_loss_kernel,
        n_student=ns, n_teacher=nt,
        inv_student_temp=1.0 / student_temp,
        inv_teacher_temp=1.0 / teacher_temp)

    view_specs = [pl.BlockSpec((tile_b, d), lambda i: (i, 0)) for _ in views]
    in_specs = view_specs + [pl.BlockSpec((1, d), lambda i: (0, 0))]

    # generous-but-safe scoped VMEM budget (capped to v7x physical 64 MiB)
    block_bytes = 2 * tile_b * bytes_per_sample + 4 * d
    vmem_limit = int(min(64 << 20, max(32 << 20, 2 * block_bytes)))

    partial_loss, partial_tsum = pl.pallas_call(
        kernel,
        out_shape=(jax.ShapeDtypeStruct((num_tiles, 1, 128), jnp.float32),
                   jax.ShapeDtypeStruct((num_tiles, 1, d), jnp.float32)),
        grid=(num_tiles,),
        in_specs=in_specs,
        out_specs=(pl.BlockSpec((1, 1, 128), lambda i: (i, 0, 0)),
                   pl.BlockSpec((1, 1, d), lambda i: (i, 0, 0))),
        compiler_params=pltpu.CompilerParams(
            dimension_semantics=("parallel",),
            vmem_limit_bytes=vmem_limit),
    )(*views, center_f32)

    # tiny final reductions + center EMA in plain JAX
    loss = jnp.sum(partial_loss[:, 0, 0]) / (b * n_terms)
    batch_center = jnp.sum(partial_tsum[:, 0, :], axis=0, keepdims=True) / (nt * b)
    new_center = center_f32 * center_momentum + batch_center * (1.0 - center_momentum)
    return loss, new_center


def _ref_dino_loss(student_output, teacher_output, center,
                   student_temp=STUDENT_TEMP, teacher_temp=TEACHER_TEMP,
                   center_momentum=CENTER_MOMENTUM):
    s_sm = [jax.nn.log_softmax(s.astype(jnp.float32) / student_temp, axis=-1)
            for s in student_output]
    t_sm = [jax.nn.softmax((t.astype(jnp.float32) - center) / teacher_temp, axis=-1)
            for t in teacher_output]
    total = 0.0
    n = 0
    for ti, tv in enumerate(t_sm):
        for si, sv in enumerate(s_sm):
            if ti == si:
                continue
            total = total + jnp.mean(jnp.sum(-tv * sv, axis=-1))
            n += 1
    total = total / n
    bc = jnp.mean(jnp.concatenate([t.astype(jnp.float32) for t in teacher_output]),
                  axis=0, keepdims=True)
    new_center = center * center_momentum + bc * (1.0 - center_momentum)
    return total, new_center


if __name__ == "__main__":
    key = jax.random.PRNGKey(0)
    out_dim = 128          # lane-aligned last dim
    batch = 16
    n_student_views = 3
    n_teacher_views = 2

    k_s, k_t, k_c = jax.random.split(key, 3)
    student_output = [
        jax.random.normal(jax.random.fold_in(k_s, i), (batch, out_dim),
                          dtype=jnp.float32)
        for i in range(n_student_views)
    ]
    teacher_output = [
        jax.random.normal(jax.random.fold_in(k_t, i), (batch, out_dim),
                          dtype=jnp.float32)
        for i in range(n_teacher_views)
    ]
    # register_buffer('center', torch.zeros(1, out_dim)) -> deterministic zeros
    center = jnp.zeros((1, out_dim), dtype=jnp.float32)

    # multi-tile path: 2 batch tiles of 8
    loss, new_center = dino_loss(student_output, teacher_output, center, tile_b=8)
    loss = jax.block_until_ready(loss)
    new_center = jax.block_until_ready(new_center)

    ref_loss, ref_center = _ref_dino_loss(student_output, teacher_output, center)
    assert jnp.allclose(loss, ref_loss, atol=1e-4, rtol=1e-4), (loss, ref_loss)
    assert jnp.allclose(new_center, ref_center, atol=1e-5, rtol=1e-5)

    # auto-tiled (single-tile) path
    loss2, new_center2 = dino_loss(student_output, teacher_output, center)
    loss2 = jax.block_until_ready(loss2)
    new_center2 = jax.block_until_ready(new_center2)
    assert jnp.allclose(loss2, ref_loss, atol=1e-4, rtol=1e-4), (loss2, ref_loss)
    assert jnp.allclose(new_center2, ref_center, atol=1e-5, rtol=1e-5)

    # non-zero center exercises the teacher centering path
    center_nz = 0.1 * jax.random.normal(k_c, (1, out_dim), dtype=jnp.float32)
    loss3, new_center3 = dino_loss(student_output, teacher_output, center_nz, tile_b=8)
    ref_loss3, ref_center3 = _ref_dino_loss(student_output, teacher_output, center_nz)
    assert jnp.allclose(jax.block_until_ready(loss3), ref_loss3, atol=1e-4, rtol=1e-4)
    assert jnp.allclose(jax.block_until_ready(new_center3), ref_center3,
                        atol=1e-5, rtol=1e-5)

    print("KERNEL_OK")
</pallas_src>

<mosaic_0001>
module attributes {stable_mosaic.version = 11 : i64} {
  func.func @_dino_loss_kernel(%arg0: i32, %arg1: memref<8x128xf32, #tpu.memory_space<vmem>>, %arg2: memref<8x128xf32, #tpu.memory_space<vmem>>, %arg3: memref<8x128xf32, #tpu.memory_space<vmem>>, %arg4: memref<8x128xf32, #tpu.memory_space<vmem>>, %arg5: memref<8x128xf32, #tpu.memory_space<vmem>>, %arg6: memref<1x128xf32, #tpu.memory_space<vmem>>, %arg7: memref<1x1x128xf32, #tpu.memory_space<vmem>>, %arg8: memref<1x1x128xf32, #tpu.memory_space<vmem>>) attributes {dimension_semantics = [#tpu.dimension_semantics<parallel>], iteration_bounds = array<i64: 2>, scalar_prefetch = 0 : i64, scratch_operands = 0 : i64, tpu.core_type = #tpu.core_type<tc>, window_params = [{transform_indices = @transform_0, window_bounds = array<i64: 8, 128>}, {transform_indices = @transform_1, window_bounds = array<i64: 8, 128>}, {transform_indices = @transform_2, window_bounds = array<i64: 8, 128>}, {transform_indices = @transform_3, window_bounds = array<i64: 8, 128>}, {transform_indices = @transform_4, window_bounds = array<i64: 8, 128>}, {pipeline_mode = #tpu.pipeline_mode<synchronous>, transform_indices = @transform_5, window_bounds = array<i64: 1, 128>}, {transform_indices = @transform_6, window_bounds = array<i64: 1, 1, 128>}, {transform_indices = @transform_7, window_bounds = array<i64: 1, 1, 128>}]} {
    %c0 = arith.constant 0 : index
    %c0_0 = arith.constant 0 : index
    %0 = vector.load %arg6[%c0, %c0_0] : memref<1x128xf32, #tpu.memory_space<vmem>>, vector<1x128xf32>
    %cst = arith.constant 2.500000e+01 : f32
    %1 = vector.broadcast %cst : f32 to vector<1x128xf32>
    %2 = arith.mulf %0, %1 : vector<1x128xf32>
    %cst_1 = arith.constant 0.000000e+00 : f32
    %3 = vector.broadcast %cst_1 : f32 to vector<8x128xf32>
    %cst_2 = arith.constant 0.000000e+00 : f32
    %4 = vector.broadcast %cst_2 : f32 to vector<8x128xf32>
    %cst_3 = arith.constant 0.000000e+00 : f32
    %5 = vector.broadcast %cst_3 : f32 to vector<1x128xf32>
    %c0_4 = arith.constant 0 : index
    %c0_5 = arith.constant 0 : index
    %6 = vector.load %arg1[%c0_4, %c0_5] : memref<8x128xf32, #tpu.memory_space<vmem>>, vector<8x128xf32>
    %cst_6 = arith.constant 1.000000e+01 : f32
    %7 = vector.broadcast %cst_6 : f32 to vector<8x128xf32>
    %8 = arith.mulf %6, %7 : vector<8x128xf32>
    %cst_7 = arith.constant dense<0xFF800000> : vector<8xf32>
    %9 = vector.multi_reduction <maximumf>, %8, %cst_7 [1] : vector<8x128xf32> to vector<8xf32>
    %10 = vector.shape_cast %9 : vector<8xf32> to vector<8x1xf32>
    %11 = vector.broadcast %10 : vector<8x1xf32> to vector<8x128xf32>
    %12 = arith.subf %8, %11 : vector<8x128xf32>
    %13 = math.exp %12 : vector<8x128xf32>
    %cst_8 = arith.constant dense<0.000000e+00> : vector<8xf32>
    %14 = vector.multi_reduction <add>, %13, %cst_8 [1] : vector<8x128xf32> to vector<8xf32>
    %15 = vector.shape_cast %14 : vector<8xf32> to vector<8x1xf32>
    %16 = math.log %15 : vector<8x1xf32>
    %17 = vector.broadcast %16 : vector<8x1xf32> to vector<8x128xf32>
    %18 = arith.subf %12, %17 : vector<8x128xf32>
    %c0_9 = arith.constant 0 : index
    %c0_10 = arith.constant 0 : index
    %19 = vector.load %arg4[%c0_9, %c0_10] : memref<8x128xf32, #tpu.memory_space<vmem>>, vector<8x128xf32>
    %cst_11 = arith.constant 2.500000e+01 : f32
    %20 = vector.broadcast %cst_11 : f32 to vector<8x128xf32>
    %21 = arith.mulf %19, %20 : vector<8x128xf32>
    %22 = vector.broadcast %2 : vector<1x128xf32> to vector<8x128xf32>
    %23 = arith.subf %21, %22 : vector<8x128xf32>
    %cst_12 = arith.constant dense<0xFF800000> : vector<8xf32>
    %24 = vector.multi_reduction <maximumf>, %23, %cst_12 [1] : vector<8x128xf32> to vector<8xf32>
    %25 = vector.shape_cast %24 : vector<8xf32> to vector<8x1xf32>
    %26 = vector.broadcast %25 : vector<8x1xf32> to vector<8x128xf32>
    %27 = arith.subf %23, %26 : vector<8x128xf32>
    %28 = math.exp %27 : vector<8x128xf32>
    %cst_13 = arith.constant dense<0.000000e+00> : vector<8xf32>
    %29 = vector.multi_reduction <add>, %28, %cst_13 [1] : vector<8x128xf32> to vector<8xf32>
    %30 = vector.shape_cast %29 : vector<8xf32> to vector<8x1xf32>
    %cst_14 = arith.constant 1.000000e+00 : f32
    %31 = vector.broadcast %cst_14 : f32 to vector<8x1xf32>
    %32 = arith.divf %31, %30 : vector<8x1xf32>
    %33 = vector.broadcast %32 : vector<8x1xf32> to vector<8x128xf32>
    %34 = arith.mulf %28, %33 : vector<8x128xf32>
    %35 = arith.addf %3, %18 : vector<8x128xf32>
    %36 = arith.addf %4, %34 : vector<8x128xf32>
    %cst_15 = arith.constant dense<0.000000e+00> : vector<128xf32>
    %37 = vector.multi_reduction <add>, %19, %cst_15 [0] : vector<8x128xf32> to vector<128xf32>
    %38 = vector.shape_cast %37 : vector<128xf32> to vector<1x128xf32>
    %39 = arith.addf %5, %38 : vector<1x128xf32>
    %40 = arith.mulf %34, %18 : vector<8x128xf32>
    %41 = vector.shape_cast %40 : vector<8x128xf32> to vector<1x8x128xf32>
    %cst_16 = arith.constant dense<0.000000e+00> : vector<1xf32>
    %42 = vector.multi_reduction <add>, %41, %cst_16 [1, 2] : vector<1x8x128xf32> to vector<1xf32>
    %43 = vector.shape_cast %42 : vector<1xf32> to vector<1x1x1xf32>
    %44 = vector.extract %43[0, 0, 0] : f32 from vector<1x1x1xf32>
    %cst_17 = arith.constant 0.000000e+00 : f32
    %45 = arith.addf %cst_17, %44 : f32
    %c0_18 = arith.constant 0 : index
    %c0_19 = arith.constant 0 : index
    %46 = vector.load %arg2[%c0_18, %c0_19] : memref<8x128xf32, #tpu.memory_space<vmem>>, vector<8x128xf32>
    %cst_20 = arith.constant 1.000000e+01 : f32
    %47 = vector.broadcast %cst_20 : f32 to vector<8x128xf32>
    %48 = arith.mulf %46, %47 : vector<8x128xf32>
    %cst_21 = arith.constant dense<0xFF800000> : vector<8xf32>
    %49 = vector.multi_reduction <maximumf>, %48, %cst_21 [1] : vector<8x128xf32> to vector<8xf32>
    %50 = vector.shape_cast %49 : vector<8xf32> to vector<8x1xf32>
    %51 = vector.broadcast %50 : vector<8x1xf32> to vector<8x128xf32>
    %52 = arith.subf %48, %51 : vector<8x128xf32>
    %53 = math.exp %52 : vector<8x128xf32>
    %cst_22 = arith.constant dense<0.000000e+00> : vector<8xf32>
    %54 = vector.multi_reduction <add>, %53, %cst_22 [1] : vector<8x128xf32> to vector<8xf32>
    %55 = vector.shape_cast %54 : vector<8xf32> to vector<8x1xf32>
    %56 = math.log %55 : vector<8x1xf32>
    %57 = vector.broadcast %56 : vector<8x1xf32> to vector<8x128xf32>
    %58 = arith.subf %52, %57 : vector<8x128xf32>
    %c0_23 = arith.constant 0 : index
    %c0_24 = arith.constant 0 : index
    %59 = vector.load %arg5[%c0_23, %c0_24] : memref<8x128xf32, #tpu.memory_space<vmem>>, vector<8x128xf32>
    %cst_25 = arith.constant 2.500000e+01 : f32
    %60 = vector.broadcast %cst_25 : f32 to vector<8x128xf32>
    %61 = arith.mulf %59, %60 : vector<8x128xf32>
    %62 = vector.broadcast %2 : vector<1x128xf32> to vector<8x128xf32>
    %63 = arith.subf %61, %62 : vector<8x128xf32>
    %cst_26 = arith.constant dense<0xFF800000> : vector<8xf32>
    %64 = vector.multi_reduction <maximumf>, %63, %cst_26 [1] : vector<8x128xf32> to vector<8xf32>
    %65 = vector.shape_cast %64 : vector<8xf32> to vector<8x1xf32>
    %66 = vector.broadcast %65 : vector<8x1xf32> to vector<8x128xf32>
    %67 = arith.subf %63, %66 : vector<8x128xf32>
    %68 = math.exp %67 : vector<8x128xf32>
    %cst_27 = arith.constant dense<0.000000e+00> : vector<8xf32>
    %69 = vector.multi_reduction <add>, %68, %cst_27 [1] : vector<8x128xf32> to vector<8xf32>
    %70 = vector.shape_cast %69 : vector<8xf32> to vector<8x1xf32>
    %cst_28 = arith.constant 1.000000e+00 : f32
    %71 = vector.broadcast %cst_28 : f32 to vector<8x1xf32>
    %72 = arith.divf %71, %70 : vector<8x1xf32>
    %73 = vector.broadcast %72 : vector<8x1xf32> to vector<8x128xf32>
    %74 = arith.mulf %68, %73 : vector<8x128xf32>
    %75 = arith.addf %35, %58 : vector<8x128xf32>
    %76 = arith.addf %36, %74 : vector<8x128xf32>
    %cst_29 = arith.constant dense<0.000000e+00> : vector<128xf32>
    %77 = vector.multi_reduction <add>, %59, %cst_29 [0] : vector<8x128xf32> to vector<128xf32>
    %78 = vector.shape_cast %77 : vector<128xf32> to vector<1x128xf32>
    %79 = arith.addf %39, %78 : vector<1x128xf32>
    %80 = arith.mulf %74, %58 : vector<8x128xf32>
    %81 = vector.shape_cast %80 : vector<8x128xf32> to vector<1x8x128xf32>
    %cst_30 = arith.constant dense<0.000000e+00> : vector<1xf32>
    %82 = vector.multi_reduction <add>, %81, %cst_30 [1, 2] : vector<1x8x128xf32> to vector<1xf32>
    %83 = vector.shape_cast %82 : vector<1xf32> to vector<1x1x1xf32>
    %84 = vector.extract %83[0, 0, 0] : f32 from vector<1x1x1xf32>
    %85 = arith.addf %45, %84 : f32
    %c0_31 = arith.constant 0 : index
    %c0_32 = arith.constant 0 : index
    %86 = vector.load %arg3[%c0_31, %c0_32] : memref<8x128xf32, #tpu.memory_space<vmem>>, vector<8x128xf32>
    %cst_33 = arith.constant 1.000000e+01 : f32
    %87 = vector.broadcast %cst_33 : f32 to vector<8x128xf32>
    %88 = arith.mulf %86, %87 : vector<8x128xf32>
    %cst_34 = arith.constant dense<0xFF800000> : vector<8xf32>
    %89 = vector.multi_reduction <maximumf>, %88, %cst_34 [1] : vector<8x128xf32> to vector<8xf32>
    %90 = vector.shape_cast %89 : vector<8xf32> to vector<8x1xf32>
    %91 = vector.broadcast %90 : vector<8x1xf32> to vector<8x128xf32>
    %92 = arith.subf %88, %91 : vector<8x128xf32>
    %93 = math.exp %92 : vector<8x128xf32>
    %cst_35 = arith.constant dense<0.000000e+00> : vector<8xf32>
    %94 = vector.multi_reduction <add>, %93, %cst_35 [1] : vector<8x128xf32> to vector<8xf32>
    %95 = vector.shape_cast %94 : vector<8xf32> to vector<8x1xf32>
    %96 = math.log %95 : vector<8x1xf32>
    %97 = vector.broadcast %96 : vector<8x1xf32> to vector<8x128xf32>
    %98 = arith.subf %92, %97 : vector<8x128xf32>
    %99 = arith.addf %75, %98 : vector<8x128xf32>
    %100 = arith.mulf %76, %99 : vector<8x128xf32>
    %101 = vector.shape_cast %100 : vector<8x128xf32> to vector<1x8x128xf32>
    %cst_36 = arith.constant dense<0.000000e+00> : vector<1xf32>
    %102 = vector.multi_reduction <add>, %101, %cst_36 [1, 2] : vector<1x8x128xf32> to vector<1xf32>
    %103 = vector.shape_cast %102 : vector<1xf32> to vector<1x1x1xf32>
    %104 = vector.extract %103[0, 0, 0] : f32 from vector<1x1x1xf32>
    %105 = arith.subf %104, %85 : f32
    %cst_37 = arith.constant 0.000000e+00 : f32
    %106 = arith.subf %cst_37, %105 : f32
    %107 = vector.broadcast %106 : f32 to vector<1x1x128xf32>
    %c0_38 = arith.constant 0 : index
    %c0_39 = arith.constant 0 : index
    %c0_40 = arith.constant 0 : index
    %108 = vector.load %arg7[%c0_38, %c0_39, %c0_40] : memref<1x1x128xf32, #tpu.memory_space<vmem>>, vector<1x1x128xf32>
    tpu.vector_store %arg7[%c0_38, %c0_39, %c0_40], %107 {strides = array<i32>} : memref<1x1x128xf32, #tpu.memory_space<vmem>>, vector<1x1x128xf32>,
    %109 = vector.shape_cast %79 : vector<1x128xf32> to vector<1x1x128xf32>
    %c0_41 = arith.constant 0 : index
    %c0_42 = arith.constant 0 : index
    %c0_43 = arith.constant 0 : index
    %110 = vector.load %arg8[%c0_41, %c0_42, %c0_43] : memref<1x1x128xf32, #tpu.memory_space<vmem>>, vector<1x1x128xf32>
    tpu.vector_store %arg8[%c0_41, %c0_42, %c0_43], %109 {strides = array<i32>} : memref<1x1x128xf32, #tpu.memory_space<vmem>>, vector<1x1x128xf32>,
    return
  }
  func.func @transform_0(%arg0: i32) -> (i32, i32) {
    %c0_i32 = arith.constant 0 : i32
    %c0_i32_0 = arith.constant 0 : i32
    return %arg0, %c0_i32 : i32, i32
  }
  func.func @transform_1(%arg0: i32) -> (i32, i32) {
    %c0_i32 = arith.constant 0 : i32
    %c0_i32_0 = arith.constant 0 : i32
    return %arg0, %c0_i32 : i32, i32
  }
  func.func @transform_2(%arg0: i32) -> (i32, i32) {
    %c0_i32 = arith.constant 0 : i32
    %c0_i32_0 = arith.constant 0 : i32
    return %arg0, %c0_i32 : i32, i32
  }
  func.func @transform_3(%arg0: i32) -> (i32, i32) {
    %c0_i32 = arith.constant 0 : i32
    %c0_i32_0 = arith.constant 0 : i32
    return %arg0, %c0_i32 : i32, i32
  }
  func.func @transform_4(%arg0: i32) -> (i32, i32) {
    %c0_i32 = arith.constant 0 : i32
    %c0_i32_0 = arith.constant 0 : i32
    return %arg0, %c0_i32 : i32, i32
  }
  func.func @transform_5(%arg0: i32) -> (i32, i32) {
    %c0_i32 = arith.constant 0 : i32
    %c0_i32_0 = arith.constant 0 : i32
    %c0_i32_1 = arith.constant 0 : i32
    return %c0_i32, %c0_i32_0 : i32, i32
  }
  func.func @transform_6(%arg0: i32) -> (i32, i32, i32) {
    %c0_i32 = arith.constant 0 : i32
    %c0_i32_0 = arith.constant 0 : i32
    %c0_i32_1 = arith.constant 0 : i32
    return %arg0, %c0_i32, %c0_i32_0 : i32, i32, i32
  }
  func.func @transform_7(%arg0: i32) -> (i32, i32, i32) {
    %c0_i32 = arith.constant 0 : i32
    %c0_i32_0 = arith.constant 0 : i32
    %c0_i32_1 = arith.constant 0 : i32
    return %arg0, %c0_i32, %c0_i32_0 : i32, i32, i32
  }
}

</mosaic_0001>

<bundles_post_ra>
// kernel: tpu_custom_call.1
= control target key start
LH: loop header
LB: loop body
LE: loop exit
PB: predicated region body
PF: predicated region fallthrough
CT: control target
= control target key end

     0   :  { %s1543_s0 = inlined_call_operand.hbm [shape: f32[16,128], index: 0, kind: input, shape index: {}]   ;;  %s1544_s1 = inlined_call_operand.hbm [shape: f32[16,128], index: 1, kind: input, shape index: {}]   ;;  %s1545_s2 = inlined_call_operand.hbm [shape: f32[16,128], index: 2, kind: input, shape index: {}]   ;;  %s1546_s3 = inlined_call_operand.hbm [shape: f32[16,128], index: 3, kind: input, shape index: {}]   ;;  %s1547_s4 = inlined_call_operand.hbm [shape: f32[16,128], index: 4, kind: input, shape index: {}]   ;;  %s1548_s5 = inlined_call_operand.vmem [shape: f32[1,128], index: 5, kind: input, shape index: {}]   ;;  %s1549_s6 = inlined_call_operand.hbm [shape: f32[2,1,128], index: 6, kind: output, shape index: {0}]   ;;  %s1550_s7 = inlined_call_operand.hbm [shape: f32[2,1,128], index: 7, kind: output, shape index: {1}]  }
   0x1   :  { %1564 = sst [smem:[#allocation25_spill]] %s1543_s0 }
   0x2   :  { %1565 = sst [smem:[#allocation26_spill]] %s1544_s1 }
   0x3   :  { %1566 = sst [smem:[#allocation27_spill]] %s1546_s3 }
   0x4   :  { %13 = vsyncpa [#allocation3], 0 }
   0x5   :  { %15 = vsyncpa [#allocation3 + $0x1], 0 }
   0x6   :  { %16 = vsyncpa [#allocation6], 0 }
   0x7   :  { %18 = vsyncpa [#allocation6 + $0x1], 0 }
   0x8   :  { %19 = vsyncpa [#allocation9], 0 }
   0x9   :  { %21 = vsyncpa [#allocation9 + $0x1], 0 }
   0xa   :  { %22 = vsyncpa [#allocation4], 0 }
   0xb   :  { %24 = vsyncpa [#allocation4 + $0x1], 0 }
   0xc   :  { %25 = vsyncpa [#allocation13], 0 }
   0xd   :  { %27 = vsyncpa [#allocation13 + $0x1], 0  ;;  %s1206_s24 = smov 0   ;;  %s1208_s25 = smov 0  }
   0xe   :  { %s1210_s26 = smov 0   ;;  %s1212_s27 = smov 0  }
   0xf LB: > { %1567 = sst [smem:[#allocation19_spill]] %s1145_s24  ;;  %s1227_s28 = sadd.s32 4294967295, %s1157_s27   ;;  %s1157_s27 = sphi %s1212_s27, %s1596_s27   ;;  %s1153_s26 = sphi %s1210_s26, %s1598_s26   ;;  %s1149_s25 = sphi %s1208_s25, %s1600_s25   ;;  %s1145_s24 = sphi %s1206_s24, %s1599_s24  }
  0x10   : > { %1568 = sst [smem:[#allocation20_spill]] %s1153_s26  ;;  %s781_s29 = sadd.s32 4294967294, %s1157_s27  }
  0x11   : > { %1569 = sst [smem:[#allocation21_spill]] %s1157_s27  ;;  %s1231_s30 = sadd.s32 1, %s1157_s27  }
  0x12   : > { %1570 = sst [smem:[#allocation22_spill]] %s1231_s30  ;;  %s40_s8 = sadd.s32 1, %s1153_s26 }
  0x13   : > { %s37_s9 = ssub.s32 %s1157_s27, %s1231_s30  ;;  %p47_p0 = scmp.ne.s32.totalorder %s1153_s26, %s1149_s25 }
  0x14   : > { %p38_p1 = scmp.eq.s32.totalorder %s37_s9, 0  ;;  %p48_p2 = scmp.eq.s32.totalorder %s1157_s27, 0 }
  0x15   : > { %p53_p3 = scmp.ne.s32.totalorder %s1149_s25, %s1145_s24  ;;  %p54_p4 = scmp.eq.s32.totalorder %s1227_s28, 0 }
  0x16   : > { %s1243_s10 = scalar_select %p38_p1, %s1153_s26, %s40_s8  }
  0x17   : > { %p49_p5 = por %p48_p2, %p47_p0  ;;  %p1245_p6 = por %p54_p4, %p53_p3 }
  0x18   : > { %1571 = sst [smem:[#allocation23_spill]] %s1243_s10  ;;  %p202_p7 = scmp.eq.s32.totalorder %s1227_s28, 1 }
  0x19   : > { %s1572_s11 = scalar_select %p1245_p6, 1, 0 }
  0x1a   : > { %p208_p8 = scmp.eq.s32.totalorder %s781_s29, 1  ;;  %p847_p10 = scmp.lt.s32.totalorder %s1157_s27, 2 }
  0x1b   : > { %p1252_p11 = por %p202_p7, %p47_p0  ;;  %s1551_s14 = sand.u32 1, %s1153_s26  }
  0x1c   : > { %p1256_p12 = por %p208_p8, %p53_p3  ;;  %s1262_s15 = sshll.u32 %s1157_s27, 7 }
  0x1d   : > { %s1573_s12 = scalar_select %p1252_p11, 1, 0 }
  0x1e   : > { %s1574_s13 = scalar_select %p1256_p12, 1, 0 }
  0x1f   : > { %s1266_s16 = sshll.u32 %s1551_s14, 3  ;;  %p1268_p13 = pnand %p847_p10, %p49_p5 }
  0x20   : > { %1575 = sst [smem:[#allocation24_spill]] %s1574_s13  ;;  %s1552_s18 = sand.u32 1, %s1157_s27  }
  0x21   : > { %s1576_s17 = scalar_select %p1268_p13, 1, 0 }
  0x22   : > { %s1577_s1 = sld [smem:[#allocation26_spill]]  ;;  %s279_s22 = scalar_lea.vmem [#allocation5], %s1266_s16 }
  0x23   : > { %s286_s23 = sshll.u32 %s279_s22, 4  ;;  %s1285_s29 = scalar_lea.sflag [#allocation6], %s1552_s18  ;;  %s1280_s23 = int_to_ptr.vmem [resolvable:$true] %s286_s23 }
  0x24   : > { %p1291_p2 = pneg %p1268_p13 }
  0x28   : > { %s1277_s21 = scalar_lea.hbm %s1577_s1, %s1262_s15  ;;  %s906_s22 = scalar_lea.hbm %s1577_s1, 256 }
  0x29   : > { %s901_s8 = scalar_lea.hbm %s1277_s21, 128  ;;  %p907_p5 = scmp.lt.u32.totalorder %s1277_s21, %s1577_s1 }
  0x2a   : > { %p902_p1 = scmp.ne.s32.totalorder %s1277_s21, %s901_s8  ;;  %p908_p7 = scmp.lt.u32.totalorder %s906_s22, %s901_s8 }
  0x2b   : > { %p910_p10 = scmp.lt.u32.totalorder %s901_s8, %s1277_s21 }
  0x2c   : > { %p904_p3 = pnand %p1291_p2, %p902_p1  ;;  %p909_p8 = por %p908_p7, %p907_p5 }
  0x2e   : > { %p905_p4 = pneg %p904_p3  ;;  %p911_p9 = por %p910_p10, %p909_p8 }
  0x30   : > { %p912_p0 = pnand %p911_p9, %p905_p4 }
  0x32   : > { %915 = shalt.err (!%p912_p0)
}
  0x33   : > { %s916_s18 = scalar_lea.vmem %s1280_s23, 128  ;;  %s1159_s19 = smov [#allocation5]  }
  0x34   : > { %p917_p1 = scmp.ne.s32.totalorder %s1280_s23, %s916_s18  ;;  %s921_s20 = sshll.u32 %s1159_s19, 4  ;;  %s922_s20 = int_to_ptr.vmem [resolvable:$false] %s921_s20 }
  0x35   : > { %s923_s10 = scalar_lea.vmem %s922_s20, 256  ;;  %p924_p11 = scmp.lt.s32.totalorder %s1280_s23, %s922_s20 }
  0x36   : > { %p919_p3 = pnand %p917_p1, %p1291_p2  ;;  %p925_p6 = scmp.lt.s32.totalorder %s923_s10, %s916_s18 }
  0x38   : > { %p920_p12 = pneg %p919_p3  ;;  %p926_p5 = por %p925_p6, %p924_p11 }
  0x3a   : > { %p927_p7 = pnand %p926_p5, %p920_p12 }
  0x3c   : > { %930 = shalt.err (!%p927_p7)
}
  0x3d   : > { %830 = dma.hbm_to_vmem [thread:$0]  (!%p1268_p13), %s1277_s21, 128, %s1280_s23, %s1285_s29  }
  0x3e   : > { %p345_p9 = scmp.lt.s32.totalorder %s1157_s27, 3  ;;  %s1579_s3 = sld [smem:[#allocation27_spill]] }
  0x3f   : > { %p1580_p6 = scmp.ge.s32.totalorder %s1157_s27, 1  ;;  %s315_s19 = scalar_lea.vmem [#allocation8], %s1266_s16 }
  0x40   : > { %s322_s20 = sshll.u32 %s315_s19, 4  ;;  %s1582_s10 = sand.u32 1, %s1157_s27   ;;  %s323_s20 = int_to_ptr.vmem [resolvable:$true] %s322_s20 }
  0x41   : > { %p1324_p11 = pnand %p1580_p6, %p345_p9  ;;  %s1331_s21 = scalar_lea.sflag [#allocation9], %s1582_s10 }
  0x43   : > { %s1581_s22 = scalar_select %p1324_p11, 1, 0 }
  0x44   : > { %s1320_s18 = scalar_lea.hbm %s1579_s3, %s1262_s15  ;;  %s936_s1 = scalar_lea.hbm %s1579_s3, 256 }
  0x45   : > { %s931_s23 = scalar_lea.hbm %s1320_s18, 128  ;;  %p937_p8 = scmp.lt.u32.totalorder %s1320_s18, %s1579_s3 }
  0x46   : > { %p932_p12 = scmp.ne.s32.totalorder %s1320_s18, %s931_s23  ;;  %p938_p10 = scmp.lt.u32.totalorder %s936_s1, %s931_s23 }
  0x47   : > { %p940_p3 = scmp.lt.u32.totalorder %s931_s23, %s1320_s18 }
  0x48   : > { %p934_p0 = pnand %p932_p12, %p1291_p2  ;;  %p939_p1 = por %p938_p10, %p937_p8 }
  0x4a   : > { %p935_p4 = pneg %p934_p0  ;;  %p941_p5 = por %p940_p3, %p939_p1 }
  0x4c   : > { %p942_p7 = pnand %p941_p5, %p935_p4 }
  0x4e   : > { %945 = shalt.err (!%p942_p7)
}
  0x4f   : > { %s946_s19 = scalar_lea.vmem %s323_s20, 128  ;;  %s1160_s10 = smov [#allocation8]  }
  0x50   : > { %p947_p9 = scmp.ne.s32.totalorder %s323_s20, %s946_s19  ;;  %s951_s27 = sshll.u32 %s1160_s10, 4  ;;  %s952_s27 = int_to_ptr.vmem [resolvable:$false] %s951_s27 }
  0x51   : > { %s953_s14 = scalar_lea.vmem %s952_s27, 256  ;;  %p954_p0 = scmp.lt.s32.totalorder %s323_s20, %s952_s27 }
  0x52   : > { %p949_p6 = pnand %p947_p9, %p1291_p2  ;;  %p955_p11 = scmp.lt.s32.totalorder %s953_s14, %s946_s19 }
  0x54   : > { %p950_p12 = pneg %p949_p6  ;;  %p956_p13 = por %p955_p11, %p954_p0 }
  0x56   : > { %p957_p8 = pnand %p956_p13, %p950_p12 }
  0x58   : > { %960 = shalt.err (!%p957_p8)
}
  0x59   : > { %p1583_p10 = scmp.ne.s32.totalorder %s1576_s17, 0  ;;  %s1584_s0 = sld [smem:[#allocation25_spill]] }
  0x5a   : > { %s261_s27 = scalar_lea.vmem [#allocation2], %s1266_s16  ;;  %s1364_s10 = scalar_lea.hbm %s1545_s2, %s1262_s15 }
  0x5b   : > { %836 = dma.hbm_to_vmem [thread:$0]  (!%p1583_p10), %s1320_s18, 128, %s323_s20, %s1331_s21  }
  0x5c   : > { %s268_s23 = sshll.u32 %s261_s27, 4  ;;  %s1585_s14 = sand.u32 1, %s1153_s26   ;;  %s1358_s23 = int_to_ptr.vmem [resolvable:$true] %s268_s23 }
  0x5d   : > { %s258_s18 = scalar_lea.sflag [#allocation3], %s1585_s14 }
  0x5f   : > { %s1355_s13 = scalar_lea.hbm %s1584_s0, %s1262_s15  ;;  %s966_s3 = scalar_lea.hbm %s1584_s0, 256 }
  0x60   : > { %s961_s20 = scalar_lea.hbm %s1355_s13, 128  ;;  %p967_p1 = scmp.lt.u32.totalorder %s1355_s13, %s1584_s0 }
  0x61   : > { %p962_p13 = scmp.ne.s32.totalorder %s1355_s13, %s961_s20  ;;  %p968_p3 = scmp.lt.u32.totalorder %s966_s3, %s961_s20 }
  0x62   : > { %p970_p7 = scmp.lt.u32.totalorder %s961_s20, %s1355_s13 }
  0x63   : > { %p964_p11 = pnand %p962_p13, %p1291_p2  ;;  %p969_p5 = por %p968_p3, %p967_p1 }
  0x65   : > { %p965_p4 = pneg %p964_p11  ;;  %p971_p9 = por %p970_p7, %p969_p5 }
  0x67   : > { %p972_p6 = pnand %p971_p9, %p965_p4 }
  0x69   : > { %975 = shalt.err (!%p972_p6)
}
  0x6a   : > { %s976_s8 = scalar_lea.vmem %s1358_s23, 128  ;;  %s1161_s19 = smov [#allocation2]  }
  0x6b   : > { %p977_p12 = scmp.ne.s32.totalorder %s1358_s23, %s976_s8  ;;  %s981_s14 = sshll.u32 %s1161_s19, 4  ;;  %s982_s14 = int_to_ptr.vmem [resolvable:$false] %s981_s14 }
  0x6c   : > { %s983_s24 = scalar_lea.vmem %s982_s14, 256  ;;  %p984_p13 = scmp.lt.s32.totalorder %s1358_s23, %s982_s14 }
  0x6d   : > { %p979_p0 = pnand %p977_p12, %p1291_p2  ;;  %p985_p11 = scmp.lt.s32.totalorder %s983_s24, %s976_s8 }
  0x6f   : > { %p980_p8 = pneg %p979_p0  ;;  %p986_p1 = por %p985_p11, %p984_p13 }
  0x71   : > { %p987_p3 = pnand %p986_p1, %p980_p8 }
  0x73   : > { %990 = shalt.err (!%p987_p3)
}
  0x74   : > { %827 = dma.hbm_to_vmem [thread:$0]  (!%p1583_p10), %s1355_s13, 128, %s1358_s23, %s258_s18  }
  0x75   : > { %s297_s3 = scalar_lea.vmem [#allocation7], %s1266_s16  ;;  %s1394_s27 = scalar_lea.hbm %s1547_s4, %s1262_s15 }
  0x76   : > { %s304_s20 = sshll.u32 %s297_s3, 4  ;;  %s991_s8 = scalar_lea.hbm %s1364_s10, 128  ;;  %s305_s20 = int_to_ptr.vmem [resolvable:$true] %s304_s20 }
  0x77   : > { %p992_p4 = scmp.ne.s32.totalorder %s1364_s10, %s991_s8  ;;  %s996_s24 = scalar_lea.hbm %s1545_s2, 256 }
  0x78   : > { %p997_p9 = scmp.lt.u32.totalorder %s1364_s10, %s1545_s2  ;;  %p998_p6 = scmp.lt.u32.totalorder %s996_s24, %s991_s8 }
  0x79   : > { %p994_p5 = pnand %p992_p4, %p1291_p2  ;;  %p1000_p0 = scmp.lt.u32.totalorder %s991_s8, %s1364_s10 }
  0x7a   : > { %p999_p12 = por %p998_p6, %p997_p9 }
  0x7b   : > { %p995_p7 = pneg %p994_p5 }
  0x7c   : > { %p1001_p8 = por %p1000_p0, %p999_p12 }
  0x7e   : > { %p1002_p13 = pnand %p1001_p8, %p995_p7 }
  0x80   : > { %1005 = shalt.err (!%p1002_p13)
}
  0x81   : > { %s1006_s15 = scalar_lea.vmem %s305_s20, 128  ;;  %s1162_s13 = smov [#allocation7]  }
  0x82   : > { %p1007_p11 = scmp.ne.s32.totalorder %s305_s20, %s1006_s15  ;;  %s1011_s23 = sshll.u32 %s1162_s13, 4  ;;  %s1012_s23 = int_to_ptr.vmem [resolvable:$false] %s1011_s23 }
  0x83   : > { %s1013_s18 = scalar_lea.vmem %s1012_s23, 256  ;;  %p1014_p4 = scmp.lt.s32.totalorder %s305_s20, %s1012_s23 }
  0x84   : > { %p1009_p1 = pnand %p1007_p11, %p1291_p2  ;;  %p1015_p5 = scmp.lt.s32.totalorder %s1013_s18, %s1006_s15 }
  0x86   : > { %p1010_p3 = pneg %p1009_p1  ;;  %p1016_p10 = por %p1015_p5, %p1014_p4 }
  0x88   : > { %p1017_p6 = pnand %p1016_p10, %p1010_p3 }
  0x8a   : > { %1020 = shalt.err (!%p1017_p6)
}
  0x8b   : > { %p1586_p9 = scmp.ne.s32.totalorder %s1576_s17, 0  ;;  %s333_s0 = scalar_lea.vmem [#allocation10], %s1266_s16 }
  0x8c   : > { %s340_s26 = sshll.u32 %s333_s0, 4  ;;  %s1021_s3 = scalar_lea.hbm %s1394_s27, 128  ;;  %s341_s26 = int_to_ptr.vmem [resolvable:$true] %s340_s26 }
  0x8d   : > { %833 = dma.hbm_to_vmem [thread:$0]  (!%p1586_p9), %s1364_s10, 128, %s305_s20, %s1285_s29  }
  0x8e   : > { %p1022_p7 = scmp.ne.s32.totalorder %s1394_s27, %s1021_s3  ;;  %s1026_s8 = scalar_lea.hbm %s1547_s4, 256 }
  0x8f   : > { %p1027_p0 = scmp.lt.u32.totalorder %s1394_s27, %s1547_s4  ;;  %p1028_p8 = scmp.lt.u32.totalorder %s1026_s8, %s1021_s3 }
  0x90   : > { %p1024_p12 = pnand %p1022_p7, %p1291_p2  ;;  %p1030_p11 = scmp.lt.u32.totalorder %s1021_s3, %s1394_s27 }
  0x91   : > { %p1029_p13 = por %p1028_p8, %p1027_p0 }
  0x92   : > { %p1025_p10 = pneg %p1024_p12 }
  0x93   : > { %p1031_p1 = por %p1030_p11, %p1029_p13 }
  0x95   : > { %p1032_p3 = pnand %p1031_p1, %p1025_p10 }
  0x97   : > { %1035 = shalt.err (!%p1032_p3)
}
  0x98   : > { %s1036_s16 = scalar_lea.vmem %s341_s26, 128  ;;  %s1163_s29 = smov [#allocation10]  }
  0x99   : > { %p1037_p4 = scmp.ne.s32.totalorder %s341_s26, %s1036_s16  ;;  %s1041_s10 = sshll.u32 %s1163_s29, 4  ;;  %s1042_s10 = int_to_ptr.vmem [resolvable:$false] %s1041_s10 }
  0x9a   : > { %s1043_s20 = scalar_lea.vmem %s1042_s10, 256  ;;  %p1044_p7 = scmp.lt.s32.totalorder %s341_s26, %s1042_s10 }
  0x9b   : > { %p1039_p5 = pnand %p1037_p4, %p1291_p2  ;;  %p1045_p12 = scmp.lt.s32.totalorder %s1043_s20, %s1036_s16 }
  0x9d   : > { %p1040_p6 = pneg %p1039_p5  ;;  %p1046_p9 = por %p1045_p12, %p1044_p7 }
  0x9f   : > { %p1047_p0 = pnand %p1046_p9, %p1040_p6 }
  0xa1   : > { %1050 = shalt.err (!%p1047_p0)
}
  0xa2   : > { %p1587_p8 = scmp.ne.s32.totalorder %s1576_s17, 0  ;;  %p1588_p10 = scmp.ne.s32.totalorder %s1581_s22, 0 }
  0xa3   : > { %s1436_s9 = sand.u32 (!%p1588_p10), 1, %s1149_s25   ;;  %p1589_p2 = scmp.ne.s32.totalorder (!%p1588_p10), %s1572_s11, 0 }
  0xa4   : > { %839 = dma.hbm_to_vmem [thread:$0]  (!%p1587_p8), %s1394_s27, 128, %s341_s26, %s1331_s21  }
  0xa5   : > { %349 = sbr.rel (%p1588_p10) target bundleno = 731 (0x2db), region = 44  ;;  %s795_s24 = sshll.u32 (!%p1588_p10), %s1436_s9, 3 }
  0xa6   : > { %s352_s15 = scalar_lea.sflag (!%p1588_p10), [#allocation3], %s1436_s9  ;;  %s355_s13 = scalar_lea.vmem (!%p1588_p10), [#allocation2], %s795_s24 }
  0xac   : > { %1124 = dma.done.wait (%p1589_p2), %s352_s15, 128  }
  0xad   : > { %1126 = vsyncadd (%p1589_p2), %s352_s15, 4294967168  ;;  %s360_s17 = sand.u32 1, %s1227_s28   ;;  %s364_s22 = scalar_lea.vmem [#allocation5], %s795_s24 }
  0xae   : > { %s361_s21 = scalar_lea.sflag [#allocation6], %s360_s17 }
  0xaf   : > { %1128 = dma.done.wait (%p1589_p2), %s361_s21, 256  }
  0xb0   : > { %1130 = vsyncadd (%p1589_p2), %s361_s21, 4294967040  ;;  %s373_s27 = scalar_lea.vmem [#allocation7], %s795_s24  ;;  %s379_s23 = scalar_lea.sflag [#allocation9], %s360_s17 }
  0xb1   : > { %s382_s18 = scalar_lea.vmem [#allocation8], %s795_s24 }
  0xb2   : > { %1132 = dma.done.wait (%p1589_p2), %s379_s23, 256  }
  0xb3   : > { %1134 = vsyncadd (%p1589_p2), %s379_s23, 4294967040  ;;  %v462_v0 = vlaneseq  ;;  %v447_v2 = vld [vmem:[%s355_s13] sm:$0xff]  ;;  %v498_v4 = vld [vmem:[%s364_s22] sm:$0xff]  ;;  %s391_s3 = scalar_lea.vmem [#allocation10], %s795_s24  ;;  %s800_s11 = sshll.u32 %s1227_s28, 4 }
  0xb4   : > { %v543_v3 = vld [vmem:[%s373_s27] sm:$0xff]  ;;  %v448_v6 = vmul.f32 10.0, %v447_v2  ;;  %v1458_v11 = vld [vmem:[%s382_s18] sm:$0xff]  ;;  %v499_v12 = vmul.f32 10.0, %v498_v4  ;;  %s444_s1 = scalar_lea.vmem [#allocation12], %s1436_s9  ;;  %s1473_s19 = scalar_lea.hbm %s1550_s7, %s800_s11 }
  0xb5   : > { %v463_v1 = vshrl.u32 %v462_v0, 7  ;;  %v544_v7 = vmul.f32 10.0, %v543_v3  ;;  %v445_v8 = vld [vmem:[%s1548_s5] sm:$0x1]  ;;  %v460_v14 = vmul.f32 25.0, %v1458_v11  ;;  %v480_v63 = vrot.slane %v1458_v11, 4 }
  0xb6   : > { %v1456_v9 = vld [vmem:[%s391_s3] sm:$0xff]  ;;  %v446_v10 = vmul.f32 25.0, %v445_v8  ;;  %449 = vmax.xlane.f32.xlu0 %v448_v6  ;;  %s601_s14 = sshll.u32 %s444_s1, 4  ;;  %s576_s16 = scalar_lea.sflag [#allocation13], %s1436_s9  ;;  %s602_s14 = int_to_ptr.vmem [resolvable:$true] %s601_s14 }
  0xb7   : > { %v464_v5 = vsub.s32 0, %v463_v1  ;;  %545 = vmax.xlane.f32.xlu1 %v544_v7  ;;  %v511_v13 = vmul.f32 25.0, %v1456_v9  ;;  %v525_v62 = vrot.slane %v1456_v9, 4  ;;  %v481_v1 = vadd.f32 %v480_v63, %v1458_v11  ;;  %s1051_s29 = scalar_lea.vmem %s602_s14, 16  ;;  %p1590_p13 = scmp.ne.s32.totalorder %s1573_s12, 0 }
  0xb8   : > { %p1052_p9 = scmp.ne.s32.totalorder %s602_s14, %s1051_s29  ;;  %s1164_s10 = smov [#allocation12]  }
  0xb9   : > { %v465_v15 = vrot.slane %v446_v10, %v464_v5  ;;  %v526_v0 = vadd.f32 %v525_v62, %v1456_v9  ;;  %v482_v3 = vrot.slane %v481_v1, 2  ;;  %s1055_s20 = sshll.u32 %s1164_s10, 4  ;;  %s1056_s20 = int_to_ptr.vmem [resolvable:$false] %s1055_s20 }
  0xba   : > { %500 = vmax.xlane.f32.xlu0 %v499_v12  ;;  %p1053_p11 = pnand %p1052_p9, %p1590_p13  ;;  %s1057_s24 = scalar_lea.vmem %s1056_s20, 32 }
  0xbb   : > { %v467_v16 = vsub.f32 %v460_v14, %v465_v15  ;;  %v512_v17 = vsub.f32 %v511_v13, %v465_v15  ;;  %v527_v2 = vrot.slane %v526_v0, 2  ;;  %v483_v5 = vadd.f32 %v482_v3, %v481_v1  ;;  %p1058_p3 = scmp.lt.s32.totalorder %s602_s14, %s1056_s20  ;;  %p1059_p4 = scmp.lt.s32.totalorder %s1057_s24, %s1051_s29 }
  0xbc   : > { %p1054_p1 = pneg %p1053_p11 }
  0xbd   : > { %468 = vmax.xlane.f32.xlu1 %v467_v16  ;;  %v528_v4 = vadd.f32 %v527_v2, %v526_v0  ;;  %p1060_p5 = por %p1059_p4, %p1058_p3 }
  0xbe   : > { %513 = vmax.xlane.f32.xlu0 %v512_v17 }
  0xbf   : > { %p1061_p6 = pnand %p1060_p5, %p1054_p1 }
 0x143   : > { %v450_v18 = vpop.xlane.xlu0 %449 }
 0x144   : > { %v546_v19 = vpop.xlane.xlu1 %545  ;;  %v451_v20 = vsub.f32 %v448_v6, %v450_v18  ;;  %v529_v6 = vrot.slane %v528_v4, 1 }
 0x145   : > { %v547_v21 = vsub.f32 %v544_v7, %v546_v19  ;;  %v484_v7 = vrot.slane %v483_v5, 1 }
 0x146   : > { %v452_v22 = vmul.f32 1.442695, %v451_v20  ;;  %v530_v8 = vadd.f32 %v529_v6, %v528_v4 }
 0x147   : > { %v548_v23 = vmul.f32 1.442695, %v547_v21  ;;  %v501_v24 = vpop.xlane.xlu0 %500  ;;  %v485_v10 = vadd.f32 %v484_v7, %v483_v5 }
 0x148   : > { %881 = vpow2.f32 %v452_v22  ;;  %v502_v25 = vsub.f32 %v499_v12, %v501_v24 }
 0x149   : > { %883 = vpow2.f32 %v548_v23  ;;  %v531_v12 = vadd.f32 %v530_v8, %v485_v10 }
 0x14a   : > { %v469_v26 = vpop.xlane.xlu1 %468  ;;  %v503_v28 = vmul.f32 1.442695, %v502_v25 }
 0x14b   : > { %v470_v27 = vsub.f32 %v467_v16, %v469_v26  ;;  %v514_v29 = vpop.xlane.xlu0 %513  ;;  %570 = vst [vmem:[%s444_s1] sm:$0x1] %v531_v12 }
 0x14c   : > { %885 = vpow2.f32 %v503_v28  ;;  %v515_v31 = vsub.f32 %v512_v17, %v514_v29 }
 0x14d   : > { %v471_v30 = vmul.f32 1.442695, %v470_v27 }
 0x14e   : > { %v516_v32 = vmul.f32 1.442695, %v515_v31 }
 0x14f   : > { %887 = vpow2.f32 %v471_v30 }
 0x150   : > { %889 = vpow2.f32 %v516_v32 }
 0x152   : > { %v882_v33 = vpop.eup %881 }
 0x153   : > { %454 = vadd.xlane.f32.xlu1 %v882_v33  ;;  %v884_v34 = vpop.eup %883 }
 0x156   : > { %v886_v35 = vpop.eup %885 }
 0x157   : > { %505 = vadd.xlane.f32.xlu0 %v886_v35  ;;  %550 = vadd.xlane.f32.xlu1 %v884_v34 }
 0x159   : > { %v888_v36 = vpop.eup %887 }
 0x15a   : > { %v890_v37 = vpop.eup %889 }
 0x15b   : > { %518 = vadd.xlane.f32.xlu1 %v890_v37  ;;  %473 = vadd.xlane.f32.xlu0 %v888_v36 }
 0x1e0   : > { %v455_v38 = vpop.xlane.xlu1 %454 }
 0x1e1   : > { %891 = vlog2.f32 %v455_v38 }
 0x1e4   : > { %v506_v39 = vpop.xlane.xlu0 %505  ;;  %v551_v40 = vpop.xlane.xlu1 %550 }
 0x1e5   : > { %893 = vlog2.f32 %v506_v39 }
 0x1e6   : > { %895 = vlog2.f32 %v551_v40 }
 0x1e8   : > { %v474_v41 = vpop.xlane.xlu0 %473  ;;  %v519_v42 = vpop.xlane.xlu1 %518 }
 0x1e9   : > { %897 = vrcp.f32 %v474_v41 }
 0x1ea   : > { %899 = vrcp.f32 %v519_v42 }
 0x1eb   : > { %v892_v43 = vpop.eup %891 }
 0x1ec   : > { %v457_v44 = vmul.f32 0.6931472, %v892_v43 }
 0x1ee   : > { %v458_v49 = vsub.f32 %v451_v20, %v457_v44 }
 0x1ef   : > { %v894_v45 = vpop.eup %893 }
 0x1f0   : > { %v896_v46 = vpop.eup %895  ;;  %v508_v47 = vmul.f32 0.6931472, %v894_v45 }
 0x1f1   : > { %v553_v48 = vmul.f32 0.6931472, %v896_v46 }
 0x1f2   : > { %v509_v50 = vsub.f32 %v502_v25, %v508_v47 }
 0x1f3   : > { %v898_v51 = vpop.eup %897  ;;  %v554_v53 = vsub.f32 %v547_v21, %v553_v48 }
 0x1f4   : > { %v900_v52 = vpop.eup %899  ;;  %v477_v54 = vmul.f32 %v898_v51, %v888_v36  ;;  %v523_v55 = vadd.f32 %v509_v50, %v458_v49 }
 0x1f5   : > { %v522_v56 = vmul.f32 %v900_v52, %v890_v37 }
 0x1f6   : > { %v487_v57 = vmul.f32 %v477_v54, %v458_v49  ;;  %v555_v58 = vadd.f32 %v554_v53, %v523_v55 }
 0x1f7   : > { %v532_v59 = vmul.f32 %v522_v56, %v509_v50  ;;  %v524_v60 = vadd.f32 %v522_v56, %v477_v54 }
 0x1f8   : > { %488 = vadd.xlane.f32.xlu0 %v487_v57 }
 0x1f9   : > { %533 = vadd.xlane.f32.xlu1 %v532_v59  ;;  %v556_v61 = vmul.f32 %v555_v58, %v524_v60 }
 0x1fc   : > { %557 = vadd.xlane.f32.xlu0 %v556_v61 }
 0x1fd   : > { %1064 = shalt.err (!%p1061_p6)
}
 0x1fe   : > { %s1065_s15 = scalar_lea.hbm %s1473_s19, 16  ;;  %s1069_s21 = scalar_lea.hbm %s1550_s7, 32 }
 0x1ff   : > { %p1066_p7 = scmp.ne.s32.totalorder %s1473_s19, %s1065_s15  ;;  %p1070_p8 = scmp.lt.u32.totalorder %s1473_s19, %s1550_s7 }
 0x200   : > { %p1071_p10 = scmp.lt.u32.totalorder %s1069_s21, %s1065_s15  ;;  %p1073_p9 = scmp.lt.u32.totalorder %s1065_s15, %s1473_s19 }
 0x201   : > { %p1067_p12 = pnand %p1066_p7, %p1590_p13 }
 0x202   : > { %p1072_p2 = por %p1071_p10, %p1070_p8 }
 0x203   : > { %p1068_p0 = pneg %p1067_p12 }
 0x204   : > { %p1074_p11 = por %p1073_p9, %p1072_p2 }
 0x206   : > { %p1075_p1 = pnand %p1074_p11, %p1068_p0 }
 0x208   : > { %1078 = shalt.err (!%p1075_p1)
}
 0x209   : > { %821 = dma.vmem_to_hbm [thread:$0]  (%p1590_p13), %s602_s14, 16, %s1473_s19, %s576_s16  }
 0x20a   : > { %s438_s1 = scalar_lea.vmem [#allocation11], %s1436_s9  ;;  %s1499_s16 = scalar_lea.hbm %s1549_s6, %s800_s11 }
 0x20b   : > { %s588_s30 = sshll.u32 %s438_s1, 4  ;;  %s572_s29 = scalar_lea.sflag [#allocation4], %s1436_s9  ;;  %s1501_s30 = int_to_ptr.vmem [resolvable:$true] %s588_s30 }
 0x20c   : > { %s1079_s10 = scalar_lea.vmem %s1501_s30, 16  ;;  %s1165_s20 = smov [#allocation11]  }
 0x20d   : > { %p1080_p3 = scmp.ne.s32.totalorder %s1501_s30, %s1079_s10  ;;  %s1083_s28 = sshll.u32 %s1165_s20, 4  ;;  %s1084_s28 = int_to_ptr.vmem [resolvable:$false] %s1083_s28 }
 0x20e   : > { %s1085_s24 = scalar_lea.vmem %s1084_s28, 32  ;;  %p1086_p6 = scmp.lt.s32.totalorder %s1501_s30, %s1084_s28 }
 0x20f   : > { %p1081_p4 = pnand %p1080_p3, %p1590_p13  ;;  %p1087_p7 = scmp.lt.s32.totalorder %s1085_s24, %s1079_s10 }
 0x211   : > { %p1082_p5 = pneg %p1081_p4  ;;  %p1088_p12 = por %p1087_p7, %p1086_p6 }
 0x213   : > { %p1089_p0 = pnand %p1088_p12, %p1082_p5 }
 0x285   : > { %v489_v9 = vpop.xlane.xlu0 %488 }
 0x286   : > { %v490_v11 = vrot.slane %v489_v9, 4  ;;  %v534_v13 = vpop.xlane.xlu1 %533 }
 0x287   : > { %v535_v14 = vrot.slane %v534_v13, 4 }
 0x288   : > { %v491_v15 = vadd.f32 %v490_v11, %v489_v9 }
 0x289   : > { %v536_v16 = vadd.f32 %v535_v14, %v534_v13  ;;  %v558_v17 = vpop.xlane.xlu0 %557 }
 0x28a   : > { %v492_v18 = vrot.slane %v491_v15, 2  ;;  %v559_v19 = vrot.slane %v558_v17, 4 }
 0x28b   : > { %v537_v20 = vrot.slane %v536_v16, 2 }
 0x28c   : > { %v560_v21 = vadd.f32 %v559_v19, %v558_v17  ;;  %v493_v22 = vadd.f32 %v492_v18, %v491_v15 }
 0x28d   : > { %v538_v23 = vadd.f32 %v537_v20, %v536_v16 }
 0x28e   : > { %v561_v24 = vrot.slane %v560_v21, 2  ;;  %v494_v25 = vrot.slane %v493_v22, 1 }
 0x28f   : > { %v539_v26 = vrot.slane %v538_v23, 1 }
 0x290   : > { %v562_v27 = vadd.f32 %v561_v24, %v560_v21  ;;  %v495_v28 = vadd.f32 %v494_v25, %v493_v22 }
 0x291   : > { %v540_v29 = vadd.f32 %v539_v26, %v538_v23 }
 0x292   : > { %804 = vpush %v495_v28  ;;  %v563_v30 = vrot.slane %v562_v27, 1 }
 0x293   : > { %806 = vpush %v540_v29 }
 0x294   : > { %v564_v31 = vadd.f32 %v563_v30, %v562_v27 }
 0x296   : > { %808 = vpush %v564_v31 }
 0x2c3   : > { %s805_s23 = spop %804 }
 0x2c4   : > { %s807_s18 = spop %806 }
 0x2c5   : > { %s542_s0 = sadd.f32 %s807_s18, %s805_s23 }
 0x2c7   : > { %s809_s26 = spop %808 }
 0x2c8   : > { %s566_s3 = ssub.f32 %s809_s26, %s542_s0 }
 0x2ca   : > { %s567_s8 = ssub.f32 0.0, %s566_s3 }
 0x2cc   : > { %v568_v32 = vstv %s567_s8 }
 0x2cd   : > { %569 = vst [vmem:[%s438_s1] sm:$0x1] %v568_v32 }
 0x2ce   : > { %1092 = shalt.err (!%p1089_p0)
}
 0x2cf   : > { %s1093_s9 = scalar_lea.hbm %s1499_s16, 16  ;;  %s1097_s13 = scalar_lea.hbm %s1549_s6, 32 }
 0x2d0   : > { %p1094_p8 = scmp.ne.s32.totalorder %s1499_s16, %s1093_s9  ;;  %p1098_p9 = scmp.lt.u32.totalorder %s1499_s16, %s1549_s6 }
 0x2d1   : > { %p1099_p11 = scmp.lt.u32.totalorder %s1097_s13, %s1093_s9  ;;  %p1101_p3 = scmp.lt.u32.totalorder %s1093_s9, %s1499_s16 }
 0x2d2   : > { %p1095_p10 = pnand %p1094_p8, %p1590_p13 }
 0x2d3   : > { %p1100_p1 = por %p1099_p11, %p1098_p9 }
 0x2d4   : > { %p1096_p2 = pneg %p1095_p10 }
 0x2d5   : > { %p1102_p4 = por %p1101_p3, %p1100_p1 }
 0x2d7   : > { %p1103_p5 = pnand %p1102_p4, %p1096_p2 }
 0x2d9   : > { %1106 = shalt.err (!%p1103_p5)
}
 0x2da   : > { %820 = dma.vmem_to_hbm [thread:$0]  (%p1590_p13), %s1501_s30, 16, %s1499_s16, %s572_s29  }
 0x2db PF: > { %s1591_s22 = sld [smem:[#allocation19_spill]]  ;;  %s1592_s27 = sld [smem:[#allocation24_spill]] }
 0x2dc   : > { %s1593_s23 = sld [smem:[#allocation21_spill]] }
 0x2e1   : > { %s613_s18 = sand.u32 1, %s1591_s22   ;;  %p1594_p6 = scmp.ne.s32.totalorder %s1592_s27, 0 }
 0x2e2   : > { %p1595_p7 = scmp.ge.s32.totalorder %s1593_s23, 2  ;;  %s614_s0 = scalar_lea.sflag [#allocation4], %s613_s18 }
 0x2e4   : > { %p841_p12 = pnand %p1595_p7, %p1594_p6 }
 0x2e6   : > { %1136 = dma.done.wait (!%p841_p12), %s614_s0, 16  }
 0x2e7   : > { %1138 = vsyncadd (!%p841_p12), %s614_s0, 4294967280  ;;  %s622_s26 = scalar_lea.sflag [#allocation13], %s613_s18 }
 0x2e8   : > { %1140 = dma.done.wait (!%p841_p12), %s622_s26, 16  }
 0x2e9   : > { %1142 = vsyncadd (!%p841_p12), %s622_s26, 4294967280  ;;  %s1596_s27 = sld [smem:[#allocation22_spill]]  ;;  %s1597_s12 = sld [smem:[#allocation20_spill]] }
 0x2ea   : > { %s1598_s26 = sld [smem:[#allocation23_spill]]  ;;  %s1599_s24 = smov %s1149_s25 }
 0x2ef   : > { %p30_p13 = scmp.ge.s32.totalorder %s1596_s27, 4   ;;  %s1600_s25 = smov %s1597_s12 }
 0x2f1   :  { %32 = sbr.rel (!%p30_p13) target bundleno = 15 (0xf), region = 154 }
 0x2f8   :  { %626 = vsyncpa [#allocation3], 1 }
 0x2f9   :  { %628 = vsyncpa [#allocation3 + $0x1], 1 }
 0x2fa   :  { %629 = vsyncpa [#allocation6], 1 }
 0x2fb   :  { %631 = vsyncpa [#allocation6 + $0x1], 1 }
 0x2fc   :  { %632 = vsyncpa [#allocation9], 1 }
 0x2fd   :  { %634 = vsyncpa [#allocation9 + $0x1], 1 }
 0x2fe   :  { %635 = vsyncpa [#allocation4], 1 }
 0x2ff   :  { %637 = vsyncpa [#allocation4 + $0x1], 1 }
 0x300   :  { %638 = vsyncpa [#allocation13], 1 }
 0x301   :  { %640 = vsyncpa [#allocation13 + $0x1], 1 }

</bundles_post_ra>
